<compile_context>
chip_gen: v5e
topology: v5e:2x2
jax: 0.10.0
libtpu: 0.0.40
codegen_flags: <defaults>
</compile_context>

<pallas_src>
import functools
import math

import jax
import jax.numpy as jnp
from jax.experimental import pallas as pl
from jax.experimental.pallas import tpu as pltpu


def _round_up(n, m):
    return ((n + m - 1) // m) * m


def _mlp_kernel(x_ref, w1_ref, b1_ref, w2_ref, b2_ref, w3_ref, b3_ref, o_ref):
    # Layer 1: Linear (bf16 operands, f32 accumulation on MXU) + ReLU (f32 VPU)
    h1 = jnp.dot(x_ref[...], w1_ref[...], preferred_element_type=jnp.float32)
    h1 = jnp.maximum(h1 + b1_ref[...], 0.0)
    # Layer 2: Linear + ReLU
    h2 = jnp.dot(h1.astype(jnp.bfloat16), w2_ref[...],
                 preferred_element_type=jnp.float32)
    h2 = jnp.maximum(h2 + b2_ref[...], 0.0)
    # Output layer: Linear + Sigmoid (f32 transcendental -> EUP)
    z = jnp.dot(h2.astype(jnp.bfloat16), w3_ref[...],
                preferred_element_type=jnp.float32)
    o_ref[...] = jax.nn.sigmoid(z + b3_ref[...]).astype(o_ref.dtype)


@functools.partial(jax.jit, static_argnames=("block_b",))
def mlp_forward(x, w1, b1, w2, b2, w3, b3, *, block_b=256):
    """Pallas TPU forward pass of the 3-layer MLP.

    x:  (B, F) float32
    w1: (F, H1), b1: (1, H1)      (weights stored as (in, out), i.e. W.T)
    w2: (H1, H2), b2: (1, H2)
    w3: (H2, O),  b3: (1, O)
    returns (B, O) float32 sigmoid probabilities.
    """
    B, F = x.shape
    H1, H2, O = w1.shape[1], w2.shape[1], w3.shape[1]

    # --- pad feature dims to lane (128) multiples; zero-fill keeps results
    # exact: padded columns are 0 pre-activation, stay 0 through ReLU, and the
    # matching weight rows of the next layer are also 0. ---
    H1p = _round_up(H1, 128)
    H2p = _round_up(H2, 128)
    Op = _round_up(O, 128)

    def pad2(a, rows, cols):
        return jnp.pad(a, ((0, rows - a.shape[0]), (0, cols - a.shape[1])))

    w1p = pad2(w1, F, H1p).astype(jnp.bfloat16)
    b1p = pad2(b1, 1, H1p)                      # biases stay f32
    w2p = pad2(w2, H1p, H2p).astype(jnp.bfloat16)
    b2p = pad2(b2, 1, H2p)
    w3p = pad2(w3, H2p, Op).astype(jnp.bfloat16)
    b3p = pad2(b3, 1, Op)

    # --- batch tile: as large as block_b, but capped at ~B/2 (rounded to a
    # sublane multiple) so the grid has >=2 programs when possible (v7x). ---
    bb = min(block_b, max(8, _round_up((B + 1) // 2, 8)))
    B_pad = _round_up(B, bb)
    xp = jnp.pad(x, ((0, B_pad - B), (0, 0))).astype(jnp.bfloat16)

    grid = (B_pad // bb,)
    full = lambda shape: pl.BlockSpec(shape, lambda i: tuple(0 for _ in shape))

    out = pl.pallas_call(
        _mlp_kernel,
        out_shape=jax.ShapeDtypeStruct((B_pad, Op), jnp.float32),
        grid_spec=pl.GridSpec(
            grid=grid,
            in_specs=[
                pl.BlockSpec((bb, F), lambda i: (i, 0)),  # x tile over batch
                full((F, H1p)),
                full((1, H1p)),
                full((H1p, H2p)),
                full((1, H2p)),
                full((H2p, Op)),
                full((1, Op)),
            ],
            out_specs=pl.BlockSpec((bb, Op), lambda i: (i, 0)),  # lane-dense
        ),
        compiler_params=pltpu.CompilerParams(
            dimension_semantics=("parallel",),
        ),
    )(xp, w1p, b1p, w2p, b2p, w3p, b3p)

    # strip batch padding and padded output columns
    return out[:B, :O]


def init_params(key, input_size, hidden_sizes=(200, 100), output_size=1):
    """Deterministic init mimicking nn.Linear default (uniform +/- 1/sqrt(fan_in))."""
    sizes = [input_size] + list(hidden_sizes) + [output_size]
    params = []
    for i in range(len(sizes) - 1):
        fan_in, fan_out = sizes[i], sizes[i + 1]
        key, kw, kb = jax.random.split(key, 3)
        bound = 1.0 / math.sqrt(fan_in)
        # stored as (in, out) so the kernel computes x @ W directly
        w = jax.random.uniform(kw, (fan_in, fan_out), jnp.float32, -bound, bound)
        b = jax.random.uniform(kb, (1, fan_out), jnp.float32, -bound, bound)
        params.append((w, b))
    return params


if __name__ == "__main__":
    key = jax.random.PRNGKey(0)
    B, F = 64, 32                     # small batch, 32 input features
    hidden_sizes = (200, 100)         # PyTorch module defaults

    key, kx = jax.random.split(key)
    x = jax.random.normal(kx, (B, F), jnp.float32)

    (w1, b1), (w2, b2), (w3, b3) = init_params(key, F, hidden_sizes)

    out = mlp_forward(x, w1, b1, w2, b2, w3, b3)
    out = jax.block_until_ready(out)

    # reference check in plain JAX f32 (kernel uses bf16 matmul operands with
    # f32 accumulation -> loosened tolerance)
    ref = x
    for (w, b), act in (((w1, b1), "relu"), ((w2, b2), "relu"), ((w3, b3), "sigmoid")):
        ref = ref @ w + b
        ref = jnp.maximum(ref, 0.0) if act == "relu" else jax.nn.sigmoid(ref)
    assert out.shape == (B, 1)
    err = float(jnp.max(jnp.abs(out - ref)))
    assert jnp.allclose(out, ref, atol=2e-2, rtol=0.0), f"max abs err {err}"

    # TODO(synk): training-time pieces (Dropout, BCELoss, Adam/DP loop) are not
    # part of the inference forward pass and are intentionally not implemented.

    print("KERNEL_OK")
</pallas_src>

<mosaic_0001>
module attributes {stable_mosaic.version = 11 : i64} {
  func.func @_mlp_kernel(%arg0: i32, %arg1: memref<32x32xbf16, #tpu.memory_space<vmem>>, %arg2: memref<32x256xbf16, #tpu.memory_space<vmem>>, %arg3: memref<1x256xf32, #tpu.memory_space<vmem>>, %arg4: memref<256x128xbf16, #tpu.memory_space<vmem>>, %arg5: memref<1x128xf32, #tpu.memory_space<vmem>>, %arg6: memref<128x128xbf16, #tpu.memory_space<vmem>>, %arg7: memref<1x128xf32, #tpu.memory_space<vmem>>, %arg8: memref<32x128xf32, #tpu.memory_space<vmem>>) attributes {dimension_semantics = [#tpu.dimension_semantics<parallel>], iteration_bounds = array<i64: 2>, scalar_prefetch = 0 : i64, scratch_operands = 0 : i64, tpu.core_type = #tpu.core_type<tc>, window_params = [{transform_indices = @transform_0, window_bounds = array<i64: 32, 32>}, {pipeline_mode = #tpu.pipeline_mode<synchronous>, transform_indices = @transform_1, window_bounds = array<i64: 32, 256>}, {pipeline_mode = #tpu.pipeline_mode<synchronous>, transform_indices = @transform_2, window_bounds = array<i64: 1, 256>}, {pipeline_mode = #tpu.pipeline_mode<synchronous>, transform_indices = @transform_3, window_bounds = array<i64: 256, 128>}, {pipeline_mode = #tpu.pipeline_mode<synchronous>, transform_indices = @transform_4, window_bounds = array<i64: 1, 128>}, {pipeline_mode = #tpu.pipeline_mode<synchronous>, transform_indices = @transform_5, window_bounds = array<i64: 128, 128>}, {pipeline_mode = #tpu.pipeline_mode<synchronous>, transform_indices = @transform_6, window_bounds = array<i64: 1, 128>}, {transform_indices = @transform_7, window_bounds = array<i64: 32, 128>}]} {
    %c0 = arith.constant 0 : index
    %c0_0 = arith.constant 0 : index
    %0 = vector.load %arg1[%c0, %c0_0] : memref<32x32xbf16, #tpu.memory_space<vmem>>, vector<32x32xbf16>
    %c0_1 = arith.constant 0 : index
    %c0_2 = arith.constant 0 : index
    %1 = vector.load %arg2[%c0_1, %c0_2] : memref<32x256xbf16, #tpu.memory_space<vmem>>, vector<32x256xbf16>
    %cst = arith.constant dense<0.000000e+00> : vector<32x256xf32>
    %2 = tpu.matmul %0, %1, %cst {dimension_numbers = #tpu.dot_dimension_numbers<[1], [0], [0], [1], [0, 0, 1, 1], [], []>} : vector<32x32xbf16>, vector<32x256xbf16>, vector<32x256xf32> -> vector<32x256xf32>
    %c0_3 = arith.constant 0 : index
    %c0_4 = arith.constant 0 : index
    %3 = vector.load %arg3[%c0_3, %c0_4] : memref<1x256xf32, #tpu.memory_space<vmem>>, vector<1x256xf32>
    %4 = vector.broadcast %3 : vector<1x256xf32> to vector<32x256xf32>
    %5 = arith.addf %2, %4 : vector<32x256xf32>
    %cst_5 = arith.constant 0.000000e+00 : f32
    %6 = vector.broadcast %cst_5 : f32 to vector<32x256xf32>
    %7 = arith.maximumf %5, %6 : vector<32x256xf32>
    %8 = arith.truncf %7 : vector<32x256xf32> to vector<32x256xbf16>
    %c0_6 = arith.constant 0 : index
    %c0_7 = arith.constant 0 : index
    %9 = vector.load %arg4[%c0_6, %c0_7] : memref<256x128xbf16, #tpu.memory_space<vmem>>, vector<256x128xbf16>
    %cst_8 = arith.constant dense<0.000000e+00> : vector<32x128xf32>
    %10 = tpu.matmul %8, %9, %cst_8 {dimension_numbers = #tpu.dot_dimension_numbers<[1], [0], [0], [1], [0, 0, 1, 1], [], []>} : vector<32x256xbf16>, vector<256x128xbf16>, vector<32x128xf32> -> vector<32x128xf32>
    %c0_9 = arith.constant 0 : index
    %c0_10 = arith.constant 0 : index
    %11 = vector.load %arg5[%c0_9, %c0_10] : memref<1x128xf32, #tpu.memory_space<vmem>>, vector<1x128xf32>
    %12 = vector.broadcast %11 : vector<1x128xf32> to vector<32x128xf32>
    %13 = arith.addf %10, %12 : vector<32x128xf32>
    %cst_11 = arith.constant 0.000000e+00 : f32
    %14 = vector.broadcast %cst_11 : f32 to vector<32x128xf32>
    %15 = arith.maximumf %13, %14 : vector<32x128xf32>
    %16 = arith.truncf %15 : vector<32x128xf32> to vector<32x128xbf16>
    %c0_12 = arith.constant 0 : index
    %c0_13 = arith.constant 0 : index
    %17 = vector.load %arg6[%c0_12, %c0_13] : memref<128x128xbf16, #tpu.memory_space<vmem>>, vector<128x128xbf16>
    %cst_14 = arith.constant dense<0.000000e+00> : vector<32x128xf32>
    %18 = tpu.matmul %16, %17, %cst_14 {dimension_numbers = #tpu.dot_dimension_numbers<[1], [0], [0], [1], [0, 0, 1, 1], [], []>} : vector<32x128xbf16>, vector<128x128xbf16>, vector<32x128xf32> -> vector<32x128xf32>
    %c0_15 = arith.constant 0 : index
    %c0_16 = arith.constant 0 : index
    %19 = vector.load %arg7[%c0_15, %c0_16] : memref<1x128xf32, #tpu.memory_space<vmem>>, vector<1x128xf32>
    %20 = vector.broadcast %19 : vector<1x128xf32> to vector<32x128xf32>
    %21 = arith.addf %18, %20 : vector<32x128xf32>
    %22 = arith.negf %21 : vector<32x128xf32>
    %23 = math.exp %22 : vector<32x128xf32>
    %cst_17 = arith.constant 1.000000e+00 : f32
    %24 = vector.broadcast %cst_17 : f32 to vector<32x128xf32>
    %25 = arith.addf %24, %23 : vector<32x128xf32>
    %26 = arith.divf %24, %25 : vector<32x128xf32>
    %c0_18 = arith.constant 0 : index
    %c0_19 = arith.constant 0 : index
    %27 = vector.load %arg8[%c0_18, %c0_19] : memref<32x128xf32, #tpu.memory_space<vmem>>, vector<32x128xf32>
    tpu.vector_store %arg8[%c0_18, %c0_19], %26 {strides = array<i32>} : memref<32x128xf32, #tpu.memory_space<vmem>>, vector<32x128xf32>,
    return
  }
  func.func @transform_0(%arg0: i32) -> (i32, i32) {
    %c0_i32 = arith.constant 0 : i32
    %c0_i32_0 = arith.constant 0 : i32
    return %arg0, %c0_i32 : i32, i32
  }
  func.func @transform_1(%arg0: i32) -> (i32, i32) {
    %c0_i32 = arith.constant 0 : i32
    %c0_i32_0 = arith.constant 0 : i32
    %c0_i32_1 = arith.constant 0 : i32
    return %c0_i32, %c0_i32_0 : i32, i32
  }
  func.func @transform_2(%arg0: i32) -> (i32, i32) {
    %c0_i32 = arith.constant 0 : i32
    %c0_i32_0 = arith.constant 0 : i32
    %c0_i32_1 = arith.constant 0 : i32
    return %c0_i32, %c0_i32_0 : i32, i32
  }
  func.func @transform_3(%arg0: i32) -> (i32, i32) {
    %c0_i32 = arith.constant 0 : i32
    %c0_i32_0 = arith.constant 0 : i32
    %c0_i32_1 = arith.constant 0 : i32
    return %c0_i32, %c0_i32_0 : i32, i32
  }
  func.func @transform_4(%arg0: i32) -> (i32, i32) {
    %c0_i32 = arith.constant 0 : i32
    %c0_i32_0 = arith.constant 0 : i32
    %c0_i32_1 = arith.constant 0 : i32
    return %c0_i32, %c0_i32_0 : i32, i32
  }
  func.func @transform_5(%arg0: i32) -> (i32, i32) {
    %c0_i32 = arith.constant 0 : i32
    %c0_i32_0 = arith.constant 0 : i32
    %c0_i32_1 = arith.constant 0 : i32
    return %c0_i32, %c0_i32_0 : i32, i32
  }
  func.func @transform_6(%arg0: i32) -> (i32, i32) {
    %c0_i32 = arith.constant 0 : i32
    %c0_i32_0 = arith.constant 0 : i32
    %c0_i32_1 = arith.constant 0 : i32
    return %c0_i32, %c0_i32_0 : i32, i32
  }
  func.func @transform_7(%arg0: i32) -> (i32, i32) {
    %c0_i32 = arith.constant 0 : i32
    %c0_i32_0 = arith.constant 0 : i32
    return %arg0, %c0_i32 : i32, i32
  }
}

</mosaic_0001>

<bundles_post_ra>
// kernel: mlp_forward.1
= control target key start
LH: loop header
LB: loop body
LE: loop exit
PB: predicated region body
PF: predicated region fallthrough
CT: control target
= control target key end

     0   :  { %s1034_s24 = smov 0   ;;  %s1170_s0 = inlined_call_operand.vmem [shape: bf16[64,32], index: 0, kind: input, shape index: {}]   ;;  %s1171_s1 = inlined_call_operand.vmem [shape: bf16[32,256], index: 1, kind: input, shape index: {}]   ;;  %s1172_s2 = inlined_call_operand.vmem [shape: f32[1,256], index: 2, kind: input, shape index: {}]   ;;  %s1173_s3 = inlined_call_operand.vmem [shape: bf16[256,128], index: 3, kind: input, shape index: {}]   ;;  %s1174_s4 = inlined_call_operand.vmem [shape: f32[1,128], index: 4, kind: input, shape index: {}]   ;;  %s1175_s5 = inlined_call_operand.vmem [shape: bf16[128,128], index: 5, kind: input, shape index: {}]   ;;  %s1176_s6 = inlined_call_operand.vmem [shape: f32[1,128], index: 6, kind: input, shape index: {}]   ;;  %s1177_s7 = inlined_call_operand.vmem [shape: f32[64,128], index: 7, kind: output, shape index: {}]  }
   0x1 LB: > { %s783_s25 = sadd.s32 4294967295, %s992_s24   ;;  %p787_p0 = scmp.ge.s32.totalorder %s992_s24, 1  ;;  %s992_s24 = sphi %s1034_s24, %s17_s24  }
   0x2   : > { %p238_p1 = scmp.lt.s32.totalorder %s992_s24, 3 }
   0x4   : > { %p239_p2 = pnand %p787_p0, %p238_p1 }
   0x5   : > { %s788_s19 = sshll.u32 (!%p239_p2), %s783_s25, 2 }
   0x6   : > { %242 = sbr.rel (%p239_p2) target bundleno = 490 (0x1ea), region = 48  ;;  %p271_p3 = scmp.lt.s32.totalorder (!%p239_p2), %s788_s19, 7 }
   0xb   : > { %v810_v0 = vld [vmem:[%s1171_s1 + $0x10] sm:$0xf]  ;;  %v927_v1 = vld [vmem:[%s1171_s1 + $0x14] sm:$0xf0]  ;;  %v926_v2 = vld [vmem:[%s1171_s1 + $0x14] sm:$0xf] }
   0xc   : > { %v811_v3 = vor.u32 %v927_v1, %v810_v0  ;;  %v812_v4 = vld [vmem:[%s1171_s1 + $0x18] sm:$0xf0]  ;;  %v802_v5 = vld [vmem:[%s1171_s1] sm:$0xf]  ;;  %v925_v6 = vld [vmem:[%s1171_s1 + $0x4] sm:$0xf0] }
   0xd   : > { %v815_v7 = vor.u32 %v926_v2, %v812_v4  ;;  %v924_v8 = vld [vmem:[%s1171_s1 + $0x4] sm:$0xf]  ;;  %v804_v9 = vld [vmem:[%s1171_s1 + $0x8] sm:$0xf0]  ;;  %v803_v10 = vor.u32 %v925_v6, %v802_v5  ;;  %v935_v11 = vld [vmem:[%s1173_s3 + $0x38] sm:$0xff]  ;;  %s1179_s19 = smov (!%p271_p3, %s788_s19), 7 }
   0xe   : > { %340 = vmatpush.bf16.msra.mxu0 %v811_v3  ;;  %v943_v12 = vld [vmem:[%s1173_s3 + $0x78] sm:$0xff]  ;;  %v807_v13 = vor.u32 %v924_v8, %v804_v9  ;;  %516 = vmatpush.bf16.msra.mxu2 %v935_v11  ;;  %v934_v14 = vld [vmem:[%s1173_s3 + $0x30] sm:$0xff]  ;;  %s789_s29 = sshll.u32 %s1179_s19, 2  ;;  %vm327_vm0 = vcmask 261120   ;;  %v933_v17 = vld [vmem:[%s1173_s3 + $0x28] sm:$0xff]  ;;  %s791_s14 = sshll.u32 %s1179_s19, 3 }
   0xf   : > { %359 = vmatpush.bf16.msra.mxu1 %v815_v7  ;;  %535 = vmatpush.bf16.msra.mxu3 %v943_v12  ;;  %v942_v15 = vld [vmem:[%s1173_s3 + $0x70] sm:$0xff]  ;;  %s274_s9 = scalar_lea.vmem %s1170_s0, %s789_s29  ;;  %v941_v18 = vld [vmem:[%s1173_s3 + $0x68] sm:$0xff]  ;;  %v932_v19 = vld [vmem:[%s1173_s3 + $0x20] sm:$0xff]  ;;  %s1161_s17 = scalar_lea.vmem %s1177_s7, %s791_s14 }
  0x10   : > { %v922_v16 = vld [vmem:[%s274_s9] sm:$0xff]  ;;  %v923_v21 = vld [vmem:[%s274_s9 + $0x8] sm:$0xff]  ;;  %v931_v22 = vld [vmem:[%s1173_s3 + $0x18] sm:$0xff] }
  0x11   : > { %v940_v20 = vld [vmem:[%s1173_s3 + $0x60] sm:$0xff]  ;;  %v939_v23 = vld [vmem:[%s1173_s3 + $0x58] sm:$0xff]  ;;  %v930_v24 = vld [vmem:[%s1173_s3 + $0x10] sm:$0xff] }
  0x12   : > { %341 = vmatpush.bf16.msra.mxu0 %v803_v10  ;;  %517 = vmatpush.bf16.msra.mxu2 %v934_v14  ;;  %v938_v25 = vld [vmem:[%s1173_s3 + $0x50] sm:$0xff]  ;;  %v929_v26 = vld [vmem:[%s1173_s3 + $0x8] sm:$0xff]  ;;  %v928_v28 = vld [vmem:[%s1173_s3] sm:$0xff] }
  0x13   : > { %360 = vmatpush.bf16.msra.mxu1 %v807_v13  ;;  %536 = vmatpush.bf16.msra.mxu3 %v942_v15  ;;  %v937_v27 = vld [vmem:[%s1173_s3 + $0x48] sm:$0xff]  ;;  %v936_v29 = vld [vmem:[%s1173_s3 + $0x40] sm:$0xff]  ;;  %v951_v30 = vld [vmem:[%s1175_s5 + $0x38] sm:$0xff] }
  0x14   : > { %v291_v31 = vld [vmem:[%s1172_s2] sm:$0x3]  ;;  %v950_v34 = vld [vmem:[%s1175_s5 + $0x30] sm:$0xff]  ;;  %v949_v37 = vld [vmem:[%s1175_s5 + $0x28] sm:$0xff] }
  0x15   : > { %816 = vmatmul.msk.bf16.vlgmr.msra.gmra.mxu0 %vm327_vm0, %v922_v16  ;;  %v293_v35 = vperm.slane %v291_v31, 0  ;;  %v294_v36 = vperm.slane %v291_v31, 1  ;;  %v948_v44 = vld [vmem:[%s1175_s5 + $0x20] sm:$0xff]  ;;  %v947_v1 = vld [vmem:[%s1175_s5 + $0x18] sm:$0xff]  ;;  %v946_v2 = vld [vmem:[%s1175_s5 + $0x10] sm:$0xff] }
  0x16   : > { %818 = vmatmul.msk.bf16.vlgmr.msra.gmra.mxu1 %vm327_vm0, %v922_v16  ;;  %518 = vmatpush.bf16.msra.mxu2 %v933_v17  ;;  %v945_v3 = vld [vmem:[%s1175_s5 + $0x8] sm:$0xff]  ;;  %v944_v4 = vld [vmem:[%s1175_s5] sm:$0xff] }
  0x17   : > { %537 = vmatpush.bf16.msra.mxu3 %v941_v18  ;;  %628 = vmatpush.bf16.msrb.mxu0 %v951_v30  ;;  %v968_v7 = vld [vmem:[%s1174_s4] ss:$0 sm:$0xff] }
  0x18   : > { %952 = vmatpush.bf16.msrb.mxu1 %v951_v30 }
  0x1a   : > { %519 = vmatpush.bf16.msra.mxu2 %v932_v19 }
  0x1b   : > { %538 = vmatpush.bf16.msra.mxu3 %v940_v20  ;;  %629 = vmatpush.bf16.msrb.mxu0 %v950_v34 }
  0x1c   : > { %953 = vmatpush.bf16.msrb.mxu1 %v950_v34 }
  0x1e   : > { %520 = vmatpush.bf16.msra.mxu2 %v931_v22 }
  0x1f   : > { %539 = vmatpush.bf16.msra.mxu3 %v939_v23  ;;  %630 = vmatpush.bf16.msrb.mxu0 %v949_v37 }
  0x20   : > { %954 = vmatpush.bf16.msrb.mxu1 %v949_v37 }
  0x22   : > { %521 = vmatpush.bf16.msra.mxu2 %v930_v24 }
  0x23   : > { %540 = vmatpush.bf16.msra.mxu3 %v938_v25  ;;  %631 = vmatpush.bf16.msrb.mxu0 %v948_v44 }
  0x24   : > { %955 = vmatpush.bf16.msrb.mxu1 %v948_v44 }
  0x25   : > { %817 = vmatmul.msk.bf16.gmra.mxu0 %vm327_vm0, %v923_v21 }
  0x26   : > { %819 = vmatmul.msk.bf16.gmra.mxu1 %vm327_vm0, %v923_v21  ;;  %522 = vmatpush.bf16.msra.mxu2 %v929_v26 }
  0x27   : > { %541 = vmatpush.bf16.msra.mxu3 %v937_v27  ;;  %632 = vmatpush.bf16.msrb.mxu0 %v947_v1 }
  0x28   : > { %956 = vmatpush.bf16.msrb.mxu1 %v947_v1 }
  0x2a   : > { %523 = vmatpush.bf16.msra.mxu2 %v928_v28  ;;  %v969_v28 = vld [vmem:[%s1176_s6] ss:$0 sm:$0xff] }
  0x2b   : > { %542 = vmatpush.bf16.msra.mxu3 %v936_v29  ;;  %633 = vmatpush.bf16.msrb.mxu0 %v946_v2 }
  0x2c   : > { %957 = vmatpush.bf16.msrb.mxu1 %v946_v2 }
  0x2f   : > { %634 = vmatpush.bf16.msrb.mxu0 %v945_v3 }
  0x30   : > { %958 = vmatpush.bf16.msrb.mxu1 %v945_v3 }
  0x33   : > { %635 = vmatpush.bf16.msrb.mxu0 %v944_v4 }
  0x34   : > { %959 = vmatpush.bf16.msrb.mxu1 %v944_v4 }
  0x92   : > { %v343_v32 = vpop.f32.mrf.mxu0 }
  0x93   : > { %v362_v33 = vpop.f32.mrf.mxu1  ;;  %v344_v38 = vadd.f32 %v343_v32, %v293_v35 }
  0x94   : > { %v363_v39 = vadd.f32 %v362_v33, %v294_v36 }
  0x95   : > { %v372_v45 = vmax.f32 %v344_v38, 0.0 }
  0x96   : > { %v373_v46 = vmax.f32 %v363_v39, 0.0 }
  0x9a   : > { %v345_v40 = vpop.f32.mrf.mxu0 }
  0x9b   : > { %v364_v41 = vpop.f32.mrf.mxu1  ;;  %v346_v42 = vadd.f32 %v345_v40, %v293_v35 }
  0x9c   : > { %v365_v43 = vadd.f32 %v364_v41, %v294_v36 }
  0x9d   : > { %v374_v47 = vmax.f32 %v346_v42, 0.0 }
  0x9e   : > { %v375_v48 = vmax.f32 %v365_v43, 0.0 }
  0x9f   : > { %v380_v49 = vpack.c.bf16 %v374_v47, %v372_v45 }
  0xa0   : > { %v381_v50 = vpack.c.bf16 %v375_v48, %v373_v46 }
  0xa1   : > { %524 = vmatmul.bf16.vlgmr.msra.gmra.mxu2 %v380_v49 }
  0xa2   : > { %543 = vmatmul.bf16.vlgmr.msra.gmra.mxu3 %v381_v50  ;;  %v348_v51 = vpop.f32.mrf.mxu0 }
  0xa3   : > { %v367_v52 = vpop.f32.mrf.mxu1  ;;  %v349_v53 = vadd.f32 %v348_v51, %v293_v35 }
  0xa4   : > { %v368_v54 = vadd.f32 %v367_v52, %v294_v36 }
  0xa5   : > { %v376_v59 = vmax.f32 %v349_v53, 0.0 }
  0xa6   : > { %v377_v60 = vmax.f32 %v368_v54, 0.0 }
  0xaa   : > { %v350_v55 = vpop.f32.mrf.mxu0 }
  0xab   : > { %v369_v56 = vpop.f32.mrf.mxu1  ;;  %v351_v57 = vadd.f32 %v350_v55, %v293_v35 }
  0xac   : > { %v370_v58 = vadd.f32 %v369_v56, %v294_v36 }
  0xad   : > { %v378_v61 = vmax.f32 %v351_v57, 0.0 }
  0xae   : > { %v379_v62 = vmax.f32 %v370_v58, 0.0 }
  0xaf   : > { %v382_v63 = vpack.c.bf16 %v378_v61, %v376_v59 }
  0xb0   : > { %v383_v0 = vpack.c.bf16 %v379_v62, %v377_v60 }
  0xb1   : > { %529 = vmatmul.bf16.gmra.mxu2 %v382_v63 }
  0xb2   : > { %548 = vmatmul.bf16.gmra.mxu3 %v383_v0 }
 0x124   : > { %v525_v5 = vpop.f32.mrf.mxu2 }
 0x125   : > { %v544_v6 = vpop.f32.mrf.mxu3  ;;  %v526_v8 = vadd.f32 %v968_v7, %v525_v5 }
 0x127   : > { %v545_v11 = vadd.f32 %v544_v6, %v526_v8 }
 0x129   : > { %v554_v14 = vmax.f32 %v545_v11, 0.0 }
 0x12c   : > { %v527_v9 = vpop.f32.mrf.mxu2 }
 0x12d   : > { %v546_v10 = vpop.f32.mrf.mxu3  ;;  %v528_v12 = vadd.f32 %v968_v7, %v527_v9 }
 0x12f   : > { %v547_v13 = vadd.f32 %v546_v10, %v528_v12 }
 0x131   : > { %v555_v15 = vmax.f32 %v547_v13, 0.0 }
 0x133   : > { %v558_v16 = vpack.c.bf16 %v555_v15, %v554_v14 }
 0x134   : > { %v530_v17 = vpop.f32.mrf.mxu2 }
 0x135   : > { %v549_v18 = vpop.f32.mrf.mxu3  ;;  %636 = vmatmul.bf16.vlgmr.msrb.gmra.mxu0 %v558_v16  ;;  %v531_v19 = vadd.f32 %v968_v7, %v530_v17 }
 0x137   : > { %v550_v21 = vadd.f32 %v549_v18, %v531_v19 }
 0x139   : > { %v556_v25 = vmax.f32 %v550_v21, 0.0 }
 0x13c   : > { %v532_v20 = vpop.f32.mrf.mxu2 }
 0x13d   : > { %v533_v22 = vadd.f32 %v968_v7, %v532_v20  ;;  %v551_v23 = vpop.f32.mrf.mxu3 }
 0x13f   : > { %v552_v24 = vadd.f32 %v551_v23, %v533_v22 }
 0x141   : > { %v557_v26 = vmax.f32 %v552_v24, 0.0 }
 0x143   : > { %v559_v27 = vpack.c.bf16 %v557_v26, %v556_v25 }
 0x145   : > { %641 = vmatmul.bf16.vlgmr.msrb.gmra.mxu1 %v559_v27 }
 0x1b2   : > { %v637_v29 = vpop.f32.mrf.mxu0 }
 0x1b3   : > { %v638_v30 = vadd.f32 %v969_v28, %v637_v29 }
 0x1b5   : > { %v916_v31 = vmul.f32 -1.442695, %v638_v30 }
 0x1b7   : > { %970 = vpow2.f32 %v916_v31 }
 0x1ba   : > { %v639_v32 = vpop.f32.mrf.mxu0 }
 0x1bb   : > { %v640_v33 = vadd.f32 %v969_v28, %v639_v32 }
 0x1bd   : > { %v971_v34 = vpop.eup %970  ;;  %v917_v35 = vmul.f32 -1.442695, %v640_v33 }
 0x1be   : > { %v659_v36 = vadd.f32 1.0, %v971_v34 }
 0x1bf   : > { %972 = vpow2.f32 %v917_v35 }
 0x1c0   : > { %974 = vrcp.f32 %v659_v36  ;;  %v674_v45 = vand.u32 2147483648, %v659_v36  ;;  %v672_v48 = vand.u32 2147483647, %v659_v36  ;;  %vm668_vm2 = vweird.f32 %v659_v36 }
 0x1c2   : > { %v642_v37 = vpop.f32.mrf.mxu1  ;;  %v675_v54 = vor.u32 1.1754944e-38, %v674_v45  ;;  %vm673_vm4 = vcmp.eq.f32.partialorder %v672_v48, 8.507059e+37 }
 0x1c3   : > { %v643_v38 = vadd.f32 %v969_v28, %v642_v37 }
 0x1c5   : > { %v973_v39 = vpop.eup %972  ;;  %v918_v40 = vmul.f32 -1.442695, %v643_v38 }
 0x1c6   : > { %v975_v41 = vpop.eup %974  ;;  %v660_v42 = vadd.f32 1.0, %v973_v39 }
 0x1c7   : > { %v664_v43 = vmul.f32 %v975_v41, %v659_v36  ;;  %976 = vpow2.f32 %v918_v40  ;;  %vm669_vm1 = vweird.f32 %v975_v41 }
 0x1c8   : > { %978 = vrcp.f32 %v660_v42  ;;  %vm670_vm3 = vmor %vm668_vm2, %vm669_vm1  ;;  %v689_v60 = vand.u32 2147483648, %v660_v42  ;;  %v687_v62 = vand.u32 2147483647, %v660_v42  ;;  %vm683_vm6 = vweird.f32 %v660_v42 }
 0x1c9   : > { %v665_v44 = vsub.f32 1.0, %v664_v43 }
 0x1ca   : > { %v644_v46 = vpop.f32.mrf.mxu1  ;;  %v690_v2 = vor.u32 1.1754944e-38, %v689_v60  ;;  %vm688_vm8 = vcmp.eq.f32.partialorder %v687_v62, 8.507059e+37 }
 0x1cb   : > { %v666_v47 = vmul.f32 %v975_v41, %v665_v44  ;;  %v645_v49 = vadd.f32 %v969_v28, %v644_v46 }
 0x1cd   : > { %v977_v50 = vpop.eup %976  ;;  %v667_v51 = vadd.f32 %v975_v41, %v666_v47  ;;  %v919_v52 = vmul.f32 -1.442695, %v645_v49 }
 0x1ce   : > { %v979_v53 = vpop.eup %978  ;;  %v661_v55 = vadd.f32 1.0, %v977_v50 }
 0x1cf   : > { %v671_v56 = vsel %vm670_vm3, %v975_v41, %v667_v51  ;;  %v679_v57 = vmul.f32 %v979_v53, %v660_v42  ;;  %980 = vpow2.f32 %v919_v52  ;;  %vm684_vm5 = vweird.f32 %v979_v53 }
 0x1d0   : > { %v676_v58 = vsel %vm673_vm4, %v675_v54, %v671_v56  ;;  %982 = vrcp.f32 %v661_v55  ;;  %vm685_vm7 = vmor %vm683_vm6, %vm684_vm5  ;;  %v704_v8 = vand.u32 2147483648, %v661_v55  ;;  %v702_v10 = vand.u32 2147483647, %v661_v55 }
 0x1d1   : > { %723 = vst [vmem:[%s1161_s17] sm:$0xff] %v676_v58  ;;  %v680_v59 = vsub.f32 1.0, %v679_v57  ;;  %vm698_vm10 = vweird.f32 %v661_v55 }
 0x1d2   : > { %v705_v13 = vor.u32 1.1754944e-38, %v704_v8  ;;  %vm703_vm12 = vcmp.eq.f32.partialorder %v702_v10, 8.507059e+37 }
 0x1d3   : > { %v681_v61 = vmul.f32 %v979_v53, %v680_v59 }
 0x1d5   : > { %v981_v63 = vpop.eup %980  ;;  %v682_v0 = vadd.f32 %v979_v53, %v681_v61 }
 0x1d6   : > { %v983_v1 = vpop.eup %982  ;;  %v662_v3 = vadd.f32 1.0, %v981_v63 }
 0x1d7   : > { %v686_v4 = vsel %vm685_vm7, %v979_v53, %v682_v0  ;;  %v694_v5 = vmul.f32 %v983_v1, %v661_v55  ;;  %vm699_vm9 = vweird.f32 %v983_v1 }
 0x1d8   : > { %v691_v6 = vsel %vm688_vm8, %v690_v2, %v686_v4  ;;  %984 = vrcp.f32 %v662_v3  ;;  %vm700_vm11 = vmor %vm698_vm10, %vm699_vm9  ;;  %v719_v18 = vand.u32 2147483648, %v662_v3  ;;  %v717_v20 = vand.u32 2147483647, %v662_v3 }
 0x1d9   : > { %724 = vst [vmem:[%s1161_s17 + $0x8] sm:$0xff] %v691_v6  ;;  %v695_v7 = vsub.f32 1.0, %v694_v5  ;;  %vm713_vm14 = vweird.f32 %v662_v3 }
 0x1da   : > { %v720_v22 = vor.u32 1.1754944e-38, %v719_v18  ;;  %vm718_vm0 = vcmp.eq.f32.partialorder %v717_v20, 8.507059e+37 }
 0x1db   : > { %v696_v9 = vmul.f32 %v983_v1, %v695_v7 }
 0x1dd   : > { %v697_v11 = vadd.f32 %v983_v1, %v696_v9 }
 0x1de   : > { %v985_v12 = vpop.eup %984 }
 0x1df   : > { %v701_v14 = vsel %vm700_vm11, %v983_v1, %v697_v11  ;;  %v709_v15 = vmul.f32 %v985_v12, %v662_v3  ;;  %vm714_vm13 = vweird.f32 %v985_v12 }
 0x1e0   : > { %v706_v16 = vsel %vm703_vm12, %v705_v13, %v701_v14  ;;  %vm715_vm15 = vmor %vm713_vm14, %vm714_vm13 }
 0x1e1   : > { %725 = vst [vmem:[%s1161_s17 + $0x10] sm:$0xff] %v706_v16  ;;  %v710_v17 = vsub.f32 1.0, %v709_v15 }
 0x1e3   : > { %v711_v19 = vmul.f32 %v985_v12, %v710_v17 }
 0x1e5   : > { %v712_v21 = vadd.f32 %v985_v12, %v711_v19 }
 0x1e7   : > { %v716_v23 = vsel %vm715_vm15, %v985_v12, %v712_v21 }
 0x1e8   : > { %v721_v24 = vsel %vm718_vm0, %v720_v22, %v716_v23 }
 0x1e9   : > { %726 = vst [vmem:[%s1161_s17 + $0x18] sm:$0xff] %v721_v24 }
 0x1ea PF: > { %s17_s24 = sadd.s32 1, %s992_s24  }
 0x1eb   : > { %p14_p4 = scmp.ge.s32.totalorder %s17_s24, 4  }
 0x1ed   :  { %16 = sbr.rel (!%p14_p4) target bundleno = 1 (0x1), region = 78 }

</bundles_post_ra>
